<compile_context>
chip_gen: v7x
topology: tpu7x:2x2x1
jax: 0.10.0
libtpu: 0.0.40
codegen_flags: <defaults>
</compile_context>

<pallas_src>
import functools

import jax
import jax.numpy as jnp
from jax.experimental import pallas as pl
from jax.experimental.pallas import tpu as pltpu

BN_EPS = 1e-5
LANE = 128
SUBLANE = 8
_SINGLE_BLOCK_MAX = 256       # whole-batch single block up to this many rows
_DEFAULT_BLOCK_M = 256        # >=128 fills v5e MXU M; >=256 fills v6e/v7x


def _round_up(n, m):
    return ((n + m - 1) // m) * m


def _pad2d(a, rows, cols):
    return jnp.pad(a, ((0, rows - a.shape[0]), (0, cols - a.shape[1])))


# ----------------------------------------------------------------------------
# Kernel bodies
# ----------------------------------------------------------------------------
def _mlp_tail(x_bn, w1_ref, b1_ref, w2_ref, b2_ref, o_ref):
    """fc1 -> ReLU -> fc2 on an already-normalized tile (dropout p=0 == id).

    Operands are cast to the prepared weight dtype only at the MXU boundary;
    accumulation stays f32 via preferred_element_type."""
    h = jnp.dot(x_bn.astype(w1_ref.dtype), w1_ref[...],
                preferred_element_type=jnp.float32)
    h = jnp.maximum(h + b1_ref[...], 0.0)                       # [tm, Hp]
    y = jnp.dot(h.astype(w2_ref.dtype), w2_ref[...],
                preferred_element_type=jnp.float32)
    o_ref[...] = (y + b2_ref[...]).astype(o_ref.dtype)          # lane-dense


def fc2_single_block_kernel(x_ref, gamma_ref, beta_ref,
                            w1_ref, b1_ref, w2_ref, b2_ref, o_ref):
    """Whole batch in one block; BN batch stats computed in-kernel."""
    x = x_ref[...]
    if x.dtype != jnp.float32:
        x = x.astype(jnp.float32)
    # One-pass stats (E[x], E[x^2]); no (x - mean) intermediate materialized.
    mean = jnp.mean(x, axis=0, keepdims=True)                    # [1, F]
    msq = jnp.mean(x * x, axis=0, keepdims=True)
    var = jnp.maximum(msq - mean * mean, 0.0)    # clamp f32 cancellation
    scale = gamma_ref[...] * jax.lax.rsqrt(var + BN_EPS)
    shift = beta_ref[...] - mean * scale
    _mlp_tail(x * scale + shift, w1_ref, b1_ref, w2_ref, b2_ref, o_ref)


def fc2_tiled_kernel(scale_ref, shift_ref, x_ref,
                     w1_ref, b1_ref, w2_ref, b2_ref, o_ref):
    """Batch-tiled body; BN already folded into per-feature scale/shift."""
    x = x_ref[...]
    if x.dtype != jnp.float32:
        x = x.astype(jnp.float32)
    _mlp_tail(x * scale_ref[...] + shift_ref[...],
              w1_ref, b1_ref, w2_ref, b2_ref, o_ref)


# ----------------------------------------------------------------------------
# One-time parameter preparation (hoisted out of the per-call path)
# ----------------------------------------------------------------------------
def prepare_params(params, *, matmul_dtype=jnp.bfloat16):
    """Pad hidden/output lane dims of the weights to multiples of 128 and
    cast the matmul operands, ONCE.  Zero padding keeps the extra columns
    numerically inert.  matmul_dtype=jnp.bfloat16 is the native MXU path on
    v6e/v7x; pass jnp.float32 for bit-exact-vs-PyTorch semantics."""
    gamma, beta, w1, b1, w2, b2 = params
    in_f, hidden = w1.shape
    out_f = w2.shape[1]
    hp = _round_up(hidden, LANE)
    op = _round_up(out_f, LANE)
    return dict(
        gamma=gamma.reshape(1, in_f).astype(jnp.float32),
        beta=beta.reshape(1, in_f).astype(jnp.float32),
        w1=_pad2d(w1, in_f, hp).astype(matmul_dtype),
        b1=_pad2d(b1.reshape(1, hidden), 1, hp).astype(jnp.float32),
        w2=_pad2d(w2, hp, op).astype(matmul_dtype),
        b2=_pad2d(b2.reshape(1, out_f), 1, op).astype(jnp.float32),
    )


def _vmem_limit(need_bytes):
    """Generation-aware VMEM budget: what we actually need (with headroom),
    capped at ~75% of physical VMEM (v7x: 64 MiB phys -> 48 MiB cap;
    v5e/v6e: 128 MiB -> 96 MiB cap)."""
    try:
        cap = pltpu.get_tpu_info().vmem_capacity_bytes
    except Exception:  # pragma: no cover - be conservative if query fails
        cap = 64 << 20
    return int(min(max(2 * need_bytes, 16 << 20), 0.75 * cap))


# ----------------------------------------------------------------------------
# Forward
# ----------------------------------------------------------------------------
@functools.partial(jax.jit,
                   static_argnames=("out_features", "block_m", "slice_output"))
def fc2_forward(x, weights, *, out_features, block_m=_DEFAULT_BLOCK_M,
                slice_output=True):
    """x: [batch, in_features] (true feature dim — never lane-padded in HBM).
    weights: output of prepare_params()."""
    gamma, beta = weights["gamma"], weights["beta"]
    w1, b1, w2, b2 = weights["w1"], weights["b1"], weights["w2"], weights["b2"]
    batch, in_f = x.shape
    op = w2.shape[1]

    resident = sum(a.size * a.dtype.itemsize
                   for a in (gamma, beta, w1, b1, w2, b2))

    if batch <= _SINGLE_BLOCK_MAX:
        # Single block: BN stats in-kernel -> only one device op per call.
        need = resident + batch * in_f * x.dtype.itemsize + batch * op * 4
        y_p = pl.pallas_call(
            fc2_single_block_kernel,
            out_shape=jax.ShapeDtypeStruct((batch, op), x.dtype),
            in_specs=[pl.BlockSpec(memory_space=pltpu.MemorySpace.VMEM)] * 7,
            out_specs=pl.BlockSpec(memory_space=pltpu.MemorySpace.VMEM),
            compiler_params=pltpu.CompilerParams(
                vmem_limit_bytes=_vmem_limit(need)),
        )(x, gamma, beta, w1, b1, w2, b2)
    else:
        # Two-stage: (1) BN scale/shift via a cheap full-batch reduction
        # (fused by XLA under this jit), (2) batch-tiled grid with
        # VMEM-resident weights and streamed, double-buffered x / o tiles.
        xf = x if x.dtype == jnp.float32 else x.astype(jnp.float32)
        mean = jnp.mean(xf, axis=0, keepdims=True)
        msq = jnp.mean(xf * xf, axis=0, keepdims=True)
        var = jnp.maximum(msq - mean * mean, 0.0)
        scale = gamma * jax.lax.rsqrt(var + BN_EPS)
        shift = beta - mean * scale

        tm = min(block_m, _round_up(batch, SUBLANE))
        grid = (pl.cdiv(batch, tm),)
        streamed = tm * in_f * x.dtype.itemsize + tm * op * x.dtype.itemsize
        need = resident + 2 * streamed          # double-buffered tiles

        y_p = pl.pallas_call(
            fc2_tiled_kernel,
            out_shape=jax.ShapeDtypeStruct((batch, op), x.dtype),
            grid_spec=pltpu.PrefetchScalarGridSpec(
                num_scalar_prefetch=0,
                grid=grid,
                in_specs=[
                    pl.BlockSpec((1, in_f), lambda i: (0, 0)),   # scale
                    pl.BlockSpec((1, in_f), lambda i: (0, 0)),   # shift
                    pl.BlockSpec((tm, in_f), lambda i: (i, 0)),  # x tile
                    pl.BlockSpec(w1.shape, lambda i: (0, 0)),    # w1 resident
                    pl.BlockSpec(b1.shape, lambda i: (0, 0)),    # b1 resident
                    pl.BlockSpec(w2.shape, lambda i: (0, 0)),    # w2 resident
                    pl.BlockSpec(b2.shape, lambda i: (0, 0)),    # b2 resident
                ],
                out_specs=pl.BlockSpec((tm, op), lambda i: (i, 0)),
            ),
            compiler_params=pltpu.CompilerParams(
                # Batch axis is embarrassingly parallel -> megacore-shard it
                # across v7x's two TensorCores (no effect on v5e/v6e).
                dimension_semantics=("parallel",),
                vmem_limit_bytes=_vmem_limit(need)),
        )(scale, shift, x, w1, b1, w2, b2)

    if slice_output:
        return y_p[:, :out_features]
    return y_p   # lane-padded [batch, round_up(out_features, 128)]


# ----------------------------------------------------------------------------
# Parameter init + pure-JAX reference (PyTorch training-mode semantics)
# ----------------------------------------------------------------------------
def init_params(key, in_features, out_features):
    hidden = in_features // 2
    k1, k2, k3, k4 = jax.random.split(key, 4)
    gamma = jnp.ones((1, in_features), jnp.float32)      # BN affine defaults
    beta = jnp.zeros((1, in_features), jnp.float32)
    lim1 = 1.0 / jnp.sqrt(jnp.float32(in_features))
    w1 = jax.random.uniform(k1, (in_features, hidden), jnp.float32, -lim1, lim1)
    b1 = jax.random.uniform(k2, (1, hidden), jnp.float32, -lim1, lim1)
    lim2 = 1.0 / jnp.sqrt(jnp.float32(hidden))
    w2 = jax.random.uniform(k3, (hidden, out_features), jnp.float32, -lim2, lim2)
    b2 = jax.random.uniform(k4, (1, out_features), jnp.float32, -lim2, lim2)
    return gamma, beta, w1, b1, w2, b2


def fc2_reference(x, params):
    gamma, beta, w1, b1, w2, b2 = params
    mean = jnp.mean(x, axis=0, keepdims=True)
    var = jnp.mean((x - mean) ** 2, axis=0, keepdims=True)   # biased variance
    x_bn = (x - mean) / jnp.sqrt(var + BN_EPS) * gamma + beta
    h = jnp.maximum(x_bn @ w1 + b1, 0.0)
    return h @ w2 + b2


if __name__ == "__main__":
    key = jax.random.PRNGKey(0)
    k_x, k_p, k_xl = jax.random.split(key, 3)

    in_features, out_features = 32, 8
    params = init_params(k_p, in_features, out_features)

    # One-time prepared weights: exact f32 path and default bf16 MXU path.
    w_f32 = prepare_params(params, matmul_dtype=jnp.float32)
    w_bf16 = prepare_params(params)                     # bf16 default

    # ---- small batch: single-block kernel (in-kernel BN stats) ----
    batch = 8
    x = jax.random.normal(k_x, (batch, in_features), jnp.float32)
    y_ref = fc2_reference(x, params)

    y = jax.block_until_ready(fc2_forward(x, w_f32, out_features=out_features))
    assert y.shape == (batch, out_features)
    assert jnp.allclose(y, y_ref, atol=1e-4, rtol=1e-4)

    y_bf = jax.block_until_ready(
        fc2_forward(x, w_bf16, out_features=out_features))
    assert jnp.allclose(y_bf, y_ref, atol=5e-2, rtol=5e-2)

    # ---- large batch: two-stage, batch-tiled grid (parallel batch axis) ----
    batch_l = 1024
    xl = jax.random.normal(k_xl, (batch_l, in_features), jnp.float32)
    yl_ref = fc2_reference(xl, params)

    yl = jax.block_until_ready(
        fc2_forward(xl, w_f32, out_features=out_features))
    assert yl.shape == (batch_l, out_features)
    assert jnp.allclose(yl, yl_ref, atol=1e-4, rtol=1e-4)

    yl_bf = jax.block_until_ready(
        fc2_forward(xl, w_bf16, out_features=out_features))
    assert jnp.allclose(yl_bf, yl_ref, atol=5e-2, rtol=5e-2)

    print("KERNEL_OK")
</pallas_src>

<mosaic_0001>
module attributes {stable_mosaic.version = 11 : i64} {
  func.func @fc2_single_block_kernel(%arg0: memref<8x32xf32, #tpu.memory_space<vmem>>, %arg1: memref<1x32xf32, #tpu.memory_space<vmem>>, %arg2: memref<1x32xf32, #tpu.memory_space<vmem>>, %arg3: memref<32x128xf32, #tpu.memory_space<vmem>>, %arg4: memref<1x128xf32, #tpu.memory_space<vmem>>, %arg5: memref<128x128xf32, #tpu.memory_space<vmem>>, %arg6: memref<1x128xf32, #tpu.memory_space<vmem>>, %arg7: memref<8x128xf32, #tpu.memory_space<vmem>>) attributes {dimension_semantics = [], scalar_prefetch = 0 : i64, scratch_operands = 0 : i64, tpu.core_type = #tpu.core_type<tc>} {
    %c0 = arith.constant 0 : index
    %c0_0 = arith.constant 0 : index
    %0 = vector.load %arg0[%c0, %c0_0] : memref<8x32xf32, #tpu.memory_space<vmem>>, vector<8x32xf32>
    %cst = arith.constant dense<0.000000e+00> : vector<32xf32>
    %1 = vector.multi_reduction <add>, %0, %cst [0] : vector<8x32xf32> to vector<32xf32>
    %2 = vector.shape_cast %1 : vector<32xf32> to vector<1x32xf32>
    %cst_1 = arith.constant 8.000000e+00 : f32
    %3 = vector.broadcast %cst_1 : f32 to vector<1x32xf32>
    %4 = arith.divf %2, %3 : vector<1x32xf32>
    %5 = arith.mulf %0, %0 : vector<8x32xf32>
    %cst_2 = arith.constant dense<0.000000e+00> : vector<32xf32>
    %6 = vector.multi_reduction <add>, %5, %cst_2 [0] : vector<8x32xf32> to vector<32xf32>
    %7 = vector.shape_cast %6 : vector<32xf32> to vector<1x32xf32>
    %cst_3 = arith.constant 8.000000e+00 : f32
    %8 = vector.broadcast %cst_3 : f32 to vector<1x32xf32>
    %9 = arith.divf %7, %8 : vector<1x32xf32>
    %10 = arith.mulf %4, %4 : vector<1x32xf32>
    %11 = arith.subf %9, %10 : vector<1x32xf32>
    %cst_4 = arith.constant 0.000000e+00 : f32
    %12 = vector.broadcast %cst_4 : f32 to vector<1x32xf32>
    %13 = arith.maximumf %11, %12 : vector<1x32xf32>
    %c0_5 = arith.constant 0 : index
    %c0_6 = arith.constant 0 : index
    %14 = vector.load %arg1[%c0_5, %c0_6] : memref<1x32xf32, #tpu.memory_space<vmem>>, vector<1x32xf32>
    %cst_7 = arith.constant 9.99999974E-6 : f32
    %15 = vector.broadcast %cst_7 : f32 to vector<1x32xf32>
    %16 = arith.addf %13, %15 : vector<1x32xf32>
    %17 = math.rsqrt %16 : vector<1x32xf32>
    %18 = arith.mulf %14, %17 : vector<1x32xf32>
    %c0_8 = arith.constant 0 : index
    %c0_9 = arith.constant 0 : index
    %19 = vector.load %arg2[%c0_8, %c0_9] : memref<1x32xf32, #tpu.memory_space<vmem>>, vector<1x32xf32>
    %20 = arith.mulf %4, %18 : vector<1x32xf32>
    %21 = arith.subf %19, %20 : vector<1x32xf32>
    %22 = vector.broadcast %18 : vector<1x32xf32> to vector<8x32xf32>
    %23 = arith.mulf %0, %22 : vector<8x32xf32>
    %24 = vector.broadcast %21 : vector<1x32xf32> to vector<8x32xf32>
    %25 = arith.addf %23, %24 : vector<8x32xf32>
    %c0_10 = arith.constant 0 : index
    %c0_11 = arith.constant 0 : index
    %26 = vector.load %arg3[%c0_10, %c0_11] : memref<32x128xf32, #tpu.memory_space<vmem>>, vector<32x128xf32>
    %cst_12 = arith.constant dense<0.000000e+00> : vector<8x128xf32>
    %27 = tpu.matmul %25, %26, %cst_12 {dimension_numbers = #tpu.dot_dimension_numbers<[1], [0], [0], [1], [0, 0, 1, 1], [], []>} : vector<8x32xf32>, vector<32x128xf32>, vector<8x128xf32> -> vector<8x128xf32>
    %c0_13 = arith.constant 0 : index
    %c0_14 = arith.constant 0 : index
    %28 = vector.load %arg4[%c0_13, %c0_14] : memref<1x128xf32, #tpu.memory_space<vmem>>, vector<1x128xf32>
    %29 = vector.broadcast %28 : vector<1x128xf32> to vector<8x128xf32>
    %30 = arith.addf %27, %29 : vector<8x128xf32>
    %cst_15 = arith.constant 0.000000e+00 : f32
    %31 = vector.broadcast %cst_15 : f32 to vector<8x128xf32>
    %32 = arith.maximumf %30, %31 : vector<8x128xf32>
    %c0_16 = arith.constant 0 : index
    %c0_17 = arith.constant 0 : index
    %33 = vector.load %arg5[%c0_16, %c0_17] : memref<128x128xf32, #tpu.memory_space<vmem>>, vector<128x128xf32>
    %cst_18 = arith.constant dense<0.000000e+00> : vector<8x128xf32>
    %34 = tpu.matmul %32, %33, %cst_18 {dimension_numbers = #tpu.dot_dimension_numbers<[1], [0], [0], [1], [0, 0, 1, 1], [], []>} : vector<8x128xf32>, vector<128x128xf32>, vector<8x128xf32> -> vector<8x128xf32>
    %c0_19 = arith.constant 0 : index
    %c0_20 = arith.constant 0 : index
    %35 = vector.load %arg6[%c0_19, %c0_20] : memref<1x128xf32, #tpu.memory_space<vmem>>, vector<1x128xf32>
    %36 = vector.broadcast %35 : vector<1x128xf32> to vector<8x128xf32>
    %37 = arith.addf %34, %36 : vector<8x128xf32>
    %c0_21 = arith.constant 0 : index
    %c0_22 = arith.constant 0 : index
    %38 = vector.load %arg7[%c0_21, %c0_22] : memref<8x128xf32, #tpu.memory_space<vmem>>, vector<8x128xf32>
    tpu.vector_store %arg7[%c0_21, %c0_22], %37 {strides = array<i32>} : memref<8x128xf32, #tpu.memory_space<vmem>>, vector<8x128xf32>,
    return
  }
}

</mosaic_0001>

<bundles_post_ra>
// kernel: fc2_forward.1
= control target key start
LH: loop header
LB: loop body
LE: loop exit
PB: predicated region body
PF: predicated region fallthrough
CT: control target
= control target key end

     0   :  { %12 = vsyncpa [#allocation3], 0  ;;  %s645_s0 = inlined_call_operand.hbm [shape: f32[8,32], index: 0, kind: input, shape index: {}]   ;;  %s646_s1 = inlined_call_operand.vmem [shape: f32[1,32], index: 1, kind: input, shape index: {}]   ;;  %s647_s2 = inlined_call_operand.vmem [shape: f32[1,32], index: 2, kind: input, shape index: {}]   ;;  %s648_s3 = inlined_call_operand.hbm [shape: f32[32,128], index: 3, kind: input, shape index: {}]   ;;  %s649_s4 = inlined_call_operand.vmem [shape: f32[1,128], index: 4, kind: input, shape index: {}]   ;;  %s650_s5 = inlined_call_operand.hbm [shape: f32[128,128], index: 5, kind: input, shape index: {}]   ;;  %s651_s6 = inlined_call_operand.vmem [shape: f32[1,128], index: 6, kind: input, shape index: {}]   ;;  %s652_s7 = inlined_call_operand.hbm [shape: f32[8,128], index: 7, kind: output, shape index: {}]  }
   0x1   :  { %13 = vsyncpa [#allocation6], 0 }
   0x2   :  { %14 = vsyncpa [#allocation4], 0  ;;  %s511_s24 = smov [#allocation5]   ;;  %s417_s28 = scalar_lea.hbm %s648_s3, 512 }
   0x3   :  { %s34_s25 = sshll.u32 %s511_s24, 4  ;;  %p418_p0 = scmp.ne.s32.totalorder %s648_s3, %s417_s28  ;;  %s35_s25 = int_to_ptr.vmem [resolvable:$true] %s34_s25 }
   0x4   :  { %p421_p1 = scmp.lt.u32.totalorder %s417_s28, %s648_s3 }
   0x6   :  { %p423_p2 = pnand %p421_p1, %p418_p0 }
   0x8   :  { %426 = shalt.err (!%p423_p2)
}
   0x9   :  { %s427_s10 = scalar_lea.vmem %s35_s25, 512  ;;  %p432_p4 = scmp.lt.s32.totalorder %s35_s25, %s35_s25 }
   0xa   :  { %p428_p3 = scmp.ne.s32.totalorder %s35_s25, %s427_s10  ;;  %p433_p5 = scmp.lt.s32.totalorder %s427_s10, %s427_s10 }
   0xc   :  { %p434_p6 = por %p433_p5, %p432_p4 }
   0xe   :  { %p435_p7 = pnand %p434_p6, %p428_p3 }
  0x10   :  { %438 = shalt.err (!%p435_p7)
}
  0x11   :  { %s512_s11 = smov 128   ;;  %s513_s12 = smov 8  }
  0x12   :  { %40 = dma.hbm_to_vmem [thread:$0]  %s648_s3, 512, %s35_s25, [#allocation6], %s512_s11, %s512_s11, %s513_s12  }
  0x13   :  { %s514_s15 = smov [#allocation2]   ;;  %s515_s17 = smov [#allocation7]  }
  0x14   :  { %s21_s16 = sshll.u32 %s514_s15, 4  ;;  %s48_s18 = sshll.u32 %s515_s17, 4  ;;  %s22_s16 = int_to_ptr.vmem [resolvable:$true] %s21_s16  ;;  %s49_s18 = int_to_ptr.vmem [resolvable:$true] %s48_s18 }
  0x15   :  { %s439_s21 = scalar_lea.hbm %s645_s0, 128 }
  0x16   :  { %p440_p8 = scmp.ne.s32.totalorder %s645_s0, %s439_s21  ;;  %p443_p9 = scmp.lt.u32.totalorder %s439_s21, %s645_s0 }
  0x18   :  { %p445_p10 = pnand %p443_p9, %p440_p8 }
  0x1a   :  { %448 = shalt.err (!%p445_p10)
}
  0x1b   :  { %s449_s3 = scalar_lea.vmem %s22_s16, 128  ;;  %p454_p12 = scmp.lt.s32.totalorder %s22_s16, %s22_s16 }
  0x1c   :  { %p450_p11 = scmp.ne.s32.totalorder %s22_s16, %s449_s3  ;;  %p455_p13 = scmp.lt.s32.totalorder %s449_s3, %s449_s3 }
  0x1e   :  { %p456_p0 = por %p455_p13, %p454_p12 }
  0x20   :  { %p457_p1 = pnand %p456_p0, %p450_p11 }
  0x22   :  { %460 = shalt.err (!%p457_p1)
}
  0x23   :  { %24 = dma.hbm_to_vmem [thread:$0]  %s645_s0, 128, %s22_s16, [#allocation3]  }
  0x24   :  { %s461_s30 = scalar_lea.hbm %s650_s5, 2048 }
  0x25   :  { %p462_p2 = scmp.ne.s32.totalorder %s650_s5, %s461_s30  ;;  %p465_p3 = scmp.lt.u32.totalorder %s461_s30, %s650_s5 }
  0x27   :  { %p467_p4 = pnand %p465_p3, %p462_p2 }
  0x29   :  { %470 = shalt.err (!%p467_p4)
}
  0x2a   :  { %s471_s14 = scalar_lea.vmem %s49_s18, 2048  ;;  %p476_p6 = scmp.lt.s32.totalorder %s49_s18, %s49_s18 }
  0x2b   :  { %p472_p5 = scmp.ne.s32.totalorder %s49_s18, %s471_s14  ;;  %p477_p7 = scmp.lt.s32.totalorder %s471_s14, %s471_s14 }
  0x2d   :  { %p478_p8 = por %p477_p7, %p476_p6 }
  0x2f   :  { %p479_p9 = pnand %p478_p8, %p472_p5 }
  0x31   :  { %482 = shalt.err (!%p479_p9)
}
  0x32   :  { %54 = dma.hbm_to_vmem [thread:$0]  %s650_s5, 2048, %s49_s18, [#allocation6], %s512_s11, %s512_s11, %s513_s12  }
  0x33   :  { %505 = dma.done.wait [#allocation3], 128  }
  0x34   :  { %506 = vsyncadd [#allocation3], 4294967168 }
  0x35   :  { %507 = dma.done.wait [#allocation6], 2560  }
  0x36   :  { %508 = vsyncadd [#allocation6], 4294964736  ;;  %v516_v0 = vmov 0.0|0.0   ;;  %vm517_vm0 = vmmov 0   ;;  %v518_v1 = vmov 0.0   ;;  %vm67_vm1 = vcmask 261120  }
  0x37   :  { %376 = vmatprep.subr.bf16.mxu0 %v516_v0  ;;  %338 = vmatprep.mubr.msk.f32.mxu0 %vm517_vm0, %v518_v1  ;;  %v110_v2 = vld [vmem:[#allocation5] sm:$0xff]  ;;  %v111_v3 = vld [vmem:[#allocation5 + $0x8] sm:$0xff]  ;;  %v112_v4 = vld [vmem:[#allocation5 + $0x10] sm:$0xff]  ;;  %v97_v51 = vlaneseq  ;;  %s519_s19 = smov [#allocation8]  }
  0x38   :  { %382 = vmatprep.subr.bf16.mxu1 %v516_v0  ;;  %373 = vmatprep.mubr.msk.f32.mxu1 %vm517_vm0, %v518_v1  ;;  %v377_v5 = vpack.c.bf16 %v111_v3, %v110_v2  ;;  %v113_v6 = vld [vmem:[#allocation5 + $0x18] sm:$0xff]  ;;  %v195_v10 = vld [vmem:[#allocation7] sm:$0xff]  ;;  %v196_v11 = vld [vmem:[#allocation7 + $0x8] sm:$0xff]  ;;  %s295_s20 = sshll.u32 %s519_s19, 4  ;;  %s296_s20 = int_to_ptr.vmem [resolvable:$true] %s295_s20 }
  0x39   :  { %v604_v7 = vld [vmem:[#allocation2] sm:$0xff]  ;;  %v380_v12 = vpack.c.bf16 %v113_v6, %v112_v4  ;;  %v383_v14 = vpack.c.bf16 %v196_v11, %v195_v10  ;;  %v197_v15 = vld [vmem:[#allocation7 + $0x10] sm:$0xff]  ;;  %v199_v21 = vld [vmem:[#allocation7 + $0x20] sm:$0xff]  ;;  %v98_v52 = vshrl.u32 %v97_v51, 7  ;;  %s483_s21 = scalar_lea.vmem %s296_s20, 128  ;;  %p488_p11 = scmp.lt.s32.totalorder %s296_s20, %s296_s20 }
  0x3a   :  { %v68_v8 = vsel %vm67_vm1, %v604_v7, 0.0  ;;  %v77_v9 = vmul.f32 %v604_v7, %v604_v7  ;;  %378 = vmatpush3.bf16.msra.mxu0 %v377_v5  ;;  %v198_v16 = vld [vmem:[#allocation7 + $0x18] sm:$0xff]  ;;  %v200_v22 = vld [vmem:[#allocation7 + $0x28] sm:$0xff]  ;;  %v201_v28 = vld [vmem:[#allocation7 + $0x30] sm:$0xff]  ;;  %p484_p10 = scmp.ne.s32.totalorder %s296_s20, %s483_s21  ;;  %p489_p12 = scmp.lt.s32.totalorder %s483_s21, %s483_s21 }
  0x3b   :  { %v69_v13 = vrot.slane %v68_v8, 4  ;;  %379 = vmatprep.subr.bf16.mxu0 %v516_v0  ;;  %384 = vmatpush3.bf16.msra.mxu1 %v383_v14  ;;  %v386_v20 = vpack.c.bf16 %v198_v16, %v197_v15  ;;  %v389_v27 = vpack.c.bf16 %v200_v22, %v199_v21  ;;  %v202_v29 = vld [vmem:[#allocation7 + $0x38] sm:$0xff]  ;;  %v203_v35 = vld [vmem:[#allocation7 + $0x40] sm:$0xff]  ;;  %v204_v36 = vld [vmem:[#allocation7 + $0x48] sm:$0xff]  ;;  %v99_v54 = vsub.s32 0, %v98_v52 }
  0x3c   :  { %v78_v17 = vsel %vm67_vm1, %v77_v9, 0.0  ;;  %385 = vmatprep.subr.bf16.mxu1 %v516_v0  ;;  %v392_v34 = vpack.c.bf16 %v202_v29, %v201_v28  ;;  %v395_v41 = vpack.c.bf16 %v204_v36, %v203_v35  ;;  %v205_v42 = vld [vmem:[#allocation7 + $0x50] sm:$0xff]  ;;  %v206_v43 = vld [vmem:[#allocation7 + $0x58] sm:$0xff]  ;;  %v207_v47 = vld [vmem:[#allocation7 + $0x60] sm:$0xff]  ;;  %p490_p13 = por %p489_p12, %p488_p11 }
  0x3d   :  { %v70_v18 = vadd.f32 %v69_v13, %v68_v8  ;;  %v79_v19 = vrot.slane %v78_v17, 4  ;;  %v398_v46 = vpack.c.bf16 %v206_v43, %v205_v42  ;;  %v208_v48 = vld [vmem:[#allocation7 + $0x68] sm:$0xff]  ;;  %v89_v53 = vld [vmem:[%s646_s1] sm:$0x1] }
  0x3e   :  { %381 = vmatpush3.bf16.msra.mxu0 %v380_v12  ;;  %v401_v50 = vpack.c.bf16 %v208_v48, %v207_v47  ;;  %v93_v57 = vld [vmem:[%s647_s2] sm:$0x1]  ;;  %p491_p0 = pnand %p490_p13, %p484_p10 }
  0x3f   :  { %v71_v23 = vrot.slane %v70_v18, 2  ;;  %v80_v24 = vadd.f32 %v79_v19, %v78_v17  ;;  %387 = vmatpush3.bf16.msra.mxu1 %v386_v20  ;;  %v210_v1 = vld [vmem:[#allocation7 + $0x78] sm:$0xff] }
  0x40   :  { %388 = vmatprep.subr.bf16.mxu1 %v516_v0  ;;  %v305_v3 = vld [vmem:[%s649_s4] ss:$0 sm:$0xff] }
  0x41   :  { %v72_v25 = vadd.f32 %v71_v23, %v70_v18  ;;  %v81_v26 = vrot.slane %v80_v24, 2 }
  0x43   :  { %v73_v30 = vrot.slane %v72_v25, 1  ;;  %v82_v31 = vadd.f32 %v81_v26, %v80_v24  ;;  %390 = vmatpush3.bf16.msra.mxu1 %v389_v27 }
  0x44   :  { %391 = vmatprep.subr.bf16.mxu1 %v516_v0 }
  0x45   :  { %v74_v32 = vadd.f32 %v73_v30, %v72_v25  ;;  %v83_v33 = vrot.slane %v82_v31, 1 }
  0x47   :  { %v76_v37 = vmul.f32 0.125, %v74_v32  ;;  %v84_v38 = vadd.f32 %v83_v33, %v82_v31  ;;  %393 = vmatpush3.bf16.msra.mxu1 %v392_v34 }
  0x48   :  { %394 = vmatprep.subr.bf16.mxu1 %v516_v0 }
  0x49   :  { %v85_v39 = vmul.f32 0.125, %v84_v38  ;;  %v86_v40 = vmul.f32 %v76_v37, %v76_v37 }
  0x4b   :  { %v87_v44 = vsub.f32 %v85_v39, %v86_v40  ;;  %396 = vmatpush3.bf16.msra.mxu1 %v395_v41 }
  0x4c   :  { %397 = vmatprep.subr.bf16.mxu1 %v516_v0 }
  0x4d   :  { %v88_v45 = vmax.f32 %v87_v44, 0.0 }
  0x4f   :  { %v90_v49 = vadd.f32 1e-05, %v88_v45  ;;  %399 = vmatpush3.bf16.msra.mxu1 %v398_v46 }
  0x50   :  { %400 = vmatprep.subr.bf16.mxu1 %v516_v0 }
  0x51   :  { %415 = vrsqrt.f32 %v90_v49 }
  0x53   :  { %402 = vmatpush3.bf16.msra.mxu1 %v401_v50 }
  0x54   :  { %403 = vmatprep.subr.bf16.mxu1 %v516_v0  ;;  %v209_v0 = vld [vmem:[#allocation7 + $0x70] sm:$0xff] }
  0x55   :  { %v404_v2 = vpack.c.bf16 %v210_v1, %v209_v0 }
  0x57   :  { %405 = vmatpush3.bf16.msra.mxu1 %v404_v2 }
  0x5b   :  { %v416_v55 = vpop.eup %415 }
  0x5c   :  { %v92_v56 = vmul.f32 %v416_v55, %v89_v53 }
  0x5e   :  { %v94_v58 = vmul.f32 %v92_v56, %v76_v37  ;;  %v100_v59 = vrot.slane %v92_v56, %v99_v54 }
  0x60   :  { %v95_v60 = vsub.f32 %v93_v57, %v94_v58  ;;  %v102_v61 = vmul.f32 %v100_v59, %v604_v7  ;;  %v307_v7 = vld [vmem:[%s651_s6] ss:$0 sm:$0xff] }
  0x62   :  { %v107_v62 = vrot.slane %v95_v60, %v99_v54 }
  0x64   :  { %v109_v63 = vadd.f32 %v107_v62, %v102_v61 }
  0x66   :  { %339 = vmatmul.mubr.msk.f32.vlgmr.msra.gmra.mrb[0].mxu0 %vm67_vm1, %v109_v63 }
 0x139   :  { %v190_v4 = vpop.f32.mrb[0].mxu0 }
 0x13a   :  { %v191_v5 = vadd.f32 %v305_v3, %v190_v4  ;;  %v340_v6 = vpop.f32.mrb[1].mxu0 }
 0x13c   :  { %v194_v8 = vmax.f32 %v191_v5, 0.0 }
 0x13e   :  { %374 = vmatmul.mubr.f32.vlgmr.msra.gmra.mrb[0].mxu1 %v194_v8 }
 0x211   :  { %v284_v9 = vpop.f32.mrb[0].mxu1 }
 0x212   :  { %v285_v10 = vadd.f32 %v307_v7, %v284_v9  ;;  %v375_v11 = vpop.f32.mrb[1].mxu1 }
 0x214   :  { %288 = vst [vmem:[#allocation8] sm:$0xff] %v285_v10 }
 0x215   :  { %494 = shalt.err (!%p491_p0)
}
 0x216   :  { %s495_s23 = scalar_lea.hbm %s652_s7, 128 }
 0x217   :  { %p496_p1 = scmp.ne.s32.totalorder %s652_s7, %s495_s23  ;;  %p499_p2 = scmp.lt.u32.totalorder %s495_s23, %s652_s7 }
 0x219   :  { %p501_p3 = pnand %p499_p2, %p496_p1 }
 0x21b   :  { %504 = shalt.err (!%p501_p3)
}
 0x21c   :  { %298 = dma.vmem_to_hbm [thread:$0]  %s296_s20, 128, %s652_s7, [#allocation4]  }
 0x21d   :  { %509 = dma.done.wait [#allocation4], 128  }
 0x21e   :  { %510 = vsyncadd [#allocation4], 4294967168 }
 0x21f   :  { %302 = vsyncpa [#allocation3], 1 }
 0x220   :  { %303 = vsyncpa [#allocation6], 1 }
 0x221   :  { %304 = vsyncpa [#allocation4], 1 }

</bundles_post_ra>
